<compile_context>
chip_gen: v7x
topology: tpu7x:2x2x1
jax: 0.10.0
libtpu: 0.0.40
codegen_flags: <defaults>
</compile_context>

<pallas_src>
import functools

import jax
import jax.numpy as jnp
from jax.experimental import pallas as pl
from jax.experimental.pallas import tpu as pltpu

EPS = 1e-5  # nn.LayerNorm default


def _round_up(x, m):
    return ((x + m - 1) // m) * m


def _vmem_capacity_bytes():
    try:
        return int(pltpu.get_tpu_info().vmem_capacity_bytes)
    except Exception:
        return 128 * 1024 * 1024  # v5e/v6e default


def prenorm_residual_kernel(x_ref, g_ref, b_ref, w1_ref, b1_ref, w2_ref, b2_ref,
                            o_ref, *, d_real):
    # x_ref: (tm, Dp) tile of rows; parameter refs are full (broadcast) blocks.
    x = x_ref[...].astype(jnp.float32)

    # Hoist + cast the small parameter blocks once.
    gamma = g_ref[...].astype(jnp.float32)   # (1, Dp)
    beta = b_ref[...].astype(jnp.float32)    # (1, Dp)
    b1 = b1_ref[...].astype(jnp.float32)     # (1, Hp)
    b2 = b2_ref[...].astype(jnp.float32)     # (1, Dp)

    # --- LayerNorm over the real last dim ---
    # Padded x columns are exactly zero, so sum(x) and sum(x*x) over the padded
    # width equal the sums over the real D; the two-moment formula avoids a lane
    # mask on the centered values.  Padded gamma/beta are zero, so padded ln
    # columns are exactly zero (the -mean term is killed by gamma==0).
    inv_d = 1.0 / d_real
    mean = jnp.sum(x, axis=-1, keepdims=True) * inv_d
    ex2 = jnp.sum(x * x, axis=-1, keepdims=True) * inv_d
    var = jnp.maximum(ex2 - mean * mean, 0.0)
    ln = (x - mean) * jax.lax.rsqrt(var + EPS) * gamma + beta

    # --- fn: Linear -> GELU -> Linear (bf16 into the MXU, f32 accumulate) ---
    h = jnp.dot(ln.astype(jnp.bfloat16), w1_ref[...],
                preferred_element_type=jnp.float32) + b1
    # TODO(synk): PyTorch nn.GELU default is exact erf-GELU; tanh approximation used here.
    h = jax.nn.gelu(h, approximate=True)
    y = jnp.dot(h.astype(jnp.bfloat16), w2_ref[...],
                preferred_element_type=jnp.float32) + b2

    # --- residual ---
    o_ref[...] = (y + x).astype(o_ref.dtype)


def prenorm_residual(x, gamma, beta, w1, b1, w2, b2, *, tm=None):
    """x: (B, N, D). gamma/beta: (1, D). w1: (D, H), b1: (1, H), w2: (H, D), b2: (1, D)."""
    B, N, D = x.shape
    H = w1.shape[1]
    M = B * N
    xb = x.dtype.itemsize

    # Lane-dense feature dims (weights / small params only; activations are only
    # padded in D when D is not already a multiple of 128).
    Dp = _round_up(D, 128)
    Hp = _round_up(H, 128)

    # ---- generation-aware VMEM budget & row-tile target ----
    cap = _vmem_capacity_bytes()
    if cap <= 64 * 1024 * 1024:         # v7x-class: 64 MiB/TC -> leave headroom
        vmem_budget = int(0.75 * cap)
        tm_target = 512
    else:                               # v5e/v6e: 128 MiB -> raise the ceiling
        vmem_budget = min(int(0.80 * cap), 104 * 1024 * 1024)
        tm_target = 1024

    # Per-row VMEM: double-buffered x + out tiles plus the f32 working set.
    per_row = 2 * Dp * xb + 2 * Dp * xb + 4 * (2 * Dp + Hp)
    # Fixed VMEM: resident bf16 weights + small params + slack for internal scratch.
    fixed = 4 * Dp * Hp + 4 * (Hp + 3 * Dp) + (1 << 20)
    # TODO(synk): if 4*Dp*Hp exceeds ~25% of VMEM (large D*H on v7x), split Hp over a
    # trailing "arbitrary" grid axis with an f32 accumulator instead of shrinking tm.
    tm_budget = max((vmem_budget - fixed) // max(per_row, 1), 8)

    # >= 2 grid steps so the row axis can shard across v7x's two TensorCores.
    two_step = _round_up(pl.cdiv(M, 2), 8)

    tm_req = tm if tm is not None else tm_target
    tm = max(8, (min(tm_req, tm_budget, two_step) // 8) * 8)

    grid = (pl.cdiv(M, tm),)

    # ---- inputs (no row padding; D padding only if needed, weights always tiny) ----
    x2d = x.reshape(M, D)
    if Dp != D:
        xf = jnp.pad(x2d, ((0, 0), (0, Dp - D)))
    else:
        xf = x2d
    g_p = jnp.pad(gamma.reshape(1, D), ((0, 0), (0, Dp - D)))
    bt_p = jnp.pad(beta.reshape(1, D), ((0, 0), (0, Dp - D)))
    w1_p = jnp.pad(w1, ((0, Dp - D), (0, Hp - H))).astype(jnp.bfloat16)
    b1_p = jnp.pad(b1.reshape(1, H), ((0, 0), (0, Hp - H)))
    w2_p = jnp.pad(w2, ((0, Hp - H), (0, Dp - D))).astype(jnp.bfloat16)
    b2_p = jnp.pad(b2.reshape(1, D), ((0, 0), (0, Dp - D)))

    const = pl.Buffered(1)  # constant operands: single-buffered (never re-fetched)

    vmem_limit = int(min(vmem_budget,
                         max(int(1.5 * (fixed + per_row * tm)), 4 * 1024 * 1024)))

    cost = pl.CostEstimate(
        flops=4 * M * Dp * Hp,                       # two matmuls at padded sizes
        transcendentals=M * Hp,                      # GELU tanh per hidden element
        bytes_accessed=2 * M * Dp * xb               # x in + out
        + 4 * Dp * Hp                                # bf16 weights
        + 4 * (3 * Dp + Hp),                         # small params
    )

    out = pl.pallas_call(
        functools.partial(prenorm_residual_kernel, d_real=D),
        out_shape=jax.ShapeDtypeStruct((M, Dp), x.dtype),
        grid_spec=pltpu.PrefetchScalarGridSpec(
            num_scalar_prefetch=0,
            grid=grid,
            in_specs=[
                pl.BlockSpec((tm, Dp), lambda i: (i, 0)),                       # x rows
                pl.BlockSpec((1, Dp), lambda i: (0, 0), pipeline_mode=const),   # gamma
                pl.BlockSpec((1, Dp), lambda i: (0, 0), pipeline_mode=const),   # beta
                pl.BlockSpec((Dp, Hp), lambda i: (0, 0), pipeline_mode=const),  # w1 (bf16)
                pl.BlockSpec((1, Hp), lambda i: (0, 0), pipeline_mode=const),   # b1
                pl.BlockSpec((Hp, Dp), lambda i: (0, 0), pipeline_mode=const),  # w2 (bf16)
                pl.BlockSpec((1, Dp), lambda i: (0, 0), pipeline_mode=const),   # b2
            ],
            out_specs=pl.BlockSpec((tm, Dp), lambda i: (i, 0)),
        ),
        compiler_params=pltpu.CompilerParams(
            dimension_semantics=("parallel",),
            vmem_limit_bytes=vmem_limit,
        ),
        cost_estimate=cost,
    )(xf, g_p, bt_p, w1_p, b1_p, w2_p, b2_p)

    if Dp != D:
        out = out[:, :D]
    return out.reshape(B, N, D)


def reference(x, gamma, beta, w1, b1, w2, b2):
    # Pure-JAX reference mirroring the kernel arithmetic (bf16 matmul operands,
    # f32 accumulation; LayerNorm/GELU/residual in f32; centered variance).
    xf = x.astype(jnp.float32)
    mean = jnp.mean(xf, axis=-1, keepdims=True)
    var = jnp.mean((xf - mean) ** 2, axis=-1, keepdims=True)
    ln = (xf - mean) * jax.lax.rsqrt(var + EPS) * gamma[0] + beta[0]
    h = jnp.dot(ln.astype(jnp.bfloat16), w1.astype(jnp.bfloat16),
                preferred_element_type=jnp.float32) + b1[0]
    h = jax.nn.gelu(h, approximate=True)
    y = jnp.dot(h.astype(jnp.bfloat16), w2.astype(jnp.bfloat16),
                preferred_element_type=jnp.float32) + b2[0]
    return (y + xf).astype(x.dtype)


if __name__ == "__main__":
    # N=9 deliberately makes M=18 not a multiple of the row tile, exercising the
    # clipped boundary block (partial read, dropped stores).
    B, N, D, H = 2, 9, 32, 64  # batch, sequence, dim, hidden dim of fn

    key = jax.random.PRNGKey(0)
    kx, k1, k2 = jax.random.split(key, 3)

    x = jax.random.normal(kx, (B, N, D), dtype=jnp.float32)

    # Deterministic parameter init (synthetic; mimics standard inits).
    gamma = jnp.ones((1, D), jnp.float32)            # LayerNorm weight
    beta = jnp.zeros((1, D), jnp.float32)            # LayerNorm bias
    w1 = jax.random.normal(k1, (D, H), jnp.float32) * (1.0 / jnp.sqrt(D))
    b1 = jnp.zeros((1, H), jnp.float32)
    w2 = jax.random.normal(k2, (H, D), jnp.float32) * (1.0 / jnp.sqrt(H))
    b2 = jnp.zeros((1, D), jnp.float32)

    out = prenorm_residual(x, gamma, beta, w1, b1, w2, b2)
    out = jax.block_until_ready(out)

    ref = reference(x, gamma, beta, w1, b1, w2, b2)
    assert out.shape == ref.shape, "shape mismatch vs reference"
    assert jnp.allclose(out, ref, atol=1e-2, rtol=1e-2), "mismatch vs pure-JAX reference"

    print("KERNEL_OK")
</pallas_src>

<mosaic_0001>
module attributes {stable_mosaic.version = 11 : i64} {
  func.func @prenorm_residual_kernel(%arg0: i32, %arg1: memref<16x128xf32, #tpu.memory_space<vmem>>, %arg2: memref<1x128xf32, #tpu.memory_space<vmem>>, %arg3: memref<1x128xf32, #tpu.memory_space<vmem>>, %arg4: memref<128x128xbf16, #tpu.memory_space<vmem>>, %arg5: memref<1x128xf32, #tpu.memory_space<vmem>>, %arg6: memref<128x128xbf16, #tpu.memory_space<vmem>>, %arg7: memref<1x128xf32, #tpu.memory_space<vmem>>, %arg8: memref<16x128xf32, #tpu.memory_space<vmem>>) attributes {dimension_semantics = [#tpu.dimension_semantics<parallel>], iteration_bounds = array<i64: 2>, scalar_prefetch = 0 : i64, scratch_operands = 0 : i64, tpu.core_type = #tpu.core_type<tc>, window_params = [{transform_indices = @transform_0, window_bounds = array<i64: 16, 128>}, {pipeline_mode = #tpu.pipeline_mode<synchronous>, transform_indices = @transform_1, window_bounds = array<i64: 1, 128>}, {pipeline_mode = #tpu.pipeline_mode<synchronous>, transform_indices = @transform_2, window_bounds = array<i64: 1, 128>}, {pipeline_mode = #tpu.pipeline_mode<synchronous>, transform_indices = @transform_3, window_bounds = array<i64: 128, 128>}, {pipeline_mode = #tpu.pipeline_mode<synchronous>, transform_indices = @transform_4, window_bounds = array<i64: 1, 128>}, {pipeline_mode = #tpu.pipeline_mode<synchronous>, transform_indices = @transform_5, window_bounds = array<i64: 128, 128>}, {pipeline_mode = #tpu.pipeline_mode<synchronous>, transform_indices = @transform_6, window_bounds = array<i64: 1, 128>}, {transform_indices = @transform_7, window_bounds = array<i64: 16, 128>}]} {
    %c0 = arith.constant 0 : index
    %c0_0 = arith.constant 0 : index
    %0 = vector.load %arg1[%c0, %c0_0] : memref<16x128xf32, #tpu.memory_space<vmem>>, vector<16x128xf32>
    %c0_1 = arith.constant 0 : index
    %c0_2 = arith.constant 0 : index
    %1 = vector.load %arg2[%c0_1, %c0_2] : memref<1x128xf32, #tpu.memory_space<vmem>>, vector<1x128xf32>
    %c0_3 = arith.constant 0 : index
    %c0_4 = arith.constant 0 : index
    %2 = vector.load %arg3[%c0_3, %c0_4] : memref<1x128xf32, #tpu.memory_space<vmem>>, vector<1x128xf32>
    %c0_5 = arith.constant 0 : index
    %c0_6 = arith.constant 0 : index
    %3 = vector.load %arg5[%c0_5, %c0_6] : memref<1x128xf32, #tpu.memory_space<vmem>>, vector<1x128xf32>
    %c0_7 = arith.constant 0 : index
    %c0_8 = arith.constant 0 : index
    %4 = vector.load %arg7[%c0_7, %c0_8] : memref<1x128xf32, #tpu.memory_space<vmem>>, vector<1x128xf32>
    %cst = arith.constant dense<0.000000e+00> : vector<16xf32>
    %5 = vector.multi_reduction <add>, %0, %cst [1] : vector<16x128xf32> to vector<16xf32>
    %6 = vector.shape_cast %5 : vector<16xf32> to vector<16x1xf32>
    %cst_9 = arith.constant 3.125000e-02 : f32
    %7 = vector.broadcast %cst_9 : f32 to vector<16x1xf32>
    %8 = arith.mulf %6, %7 : vector<16x1xf32>
    %9 = arith.mulf %0, %0 : vector<16x128xf32>
    %cst_10 = arith.constant dense<0.000000e+00> : vector<16xf32>
    %10 = vector.multi_reduction <add>, %9, %cst_10 [1] : vector<16x128xf32> to vector<16xf32>
    %11 = vector.shape_cast %10 : vector<16xf32> to vector<16x1xf32>
    %cst_11 = arith.constant 3.125000e-02 : f32
    %12 = vector.broadcast %cst_11 : f32 to vector<16x1xf32>
    %13 = arith.mulf %11, %12 : vector<16x1xf32>
    %14 = arith.mulf %8, %8 : vector<16x1xf32>
    %15 = arith.subf %13, %14 : vector<16x1xf32>
    %cst_12 = arith.constant 0.000000e+00 : f32
    %16 = vector.broadcast %cst_12 : f32 to vector<16x1xf32>
    %17 = arith.maximumf %15, %16 : vector<16x1xf32>
    %18 = vector.broadcast %8 : vector<16x1xf32> to vector<16x128xf32>
    %19 = arith.subf %0, %18 : vector<16x128xf32>
    %cst_13 = arith.constant 9.99999974E-6 : f32
    %20 = vector.broadcast %cst_13 : f32 to vector<16x1xf32>
    %21 = arith.addf %17, %20 : vector<16x1xf32>
    %22 = math.rsqrt %21 : vector<16x1xf32>
    %23 = vector.broadcast %22 : vector<16x1xf32> to vector<16x128xf32>
    %24 = arith.mulf %19, %23 : vector<16x128xf32>
    %25 = vector.broadcast %1 : vector<1x128xf32> to vector<16x128xf32>
    %26 = arith.mulf %24, %25 : vector<16x128xf32>
    %27 = vector.broadcast %2 : vector<1x128xf32> to vector<16x128xf32>
    %28 = arith.addf %26, %27 : vector<16x128xf32>
    %29 = arith.truncf %28 : vector<16x128xf32> to vector<16x128xbf16>
    %c0_14 = arith.constant 0 : index
    %c0_15 = arith.constant 0 : index
    %30 = vector.load %arg4[%c0_14, %c0_15] : memref<128x128xbf16, #tpu.memory_space<vmem>>, vector<128x128xbf16>
    %cst_16 = arith.constant dense<0.000000e+00> : vector<16x128xf32>
    %31 = tpu.matmul %29, %30, %cst_16 {dimension_numbers = #tpu.dot_dimension_numbers<[1], [0], [0], [1], [0, 0, 1, 1], [], []>} : vector<16x128xbf16>, vector<128x128xbf16>, vector<16x128xf32> -> vector<16x128xf32>
    %32 = vector.broadcast %3 : vector<1x128xf32> to vector<16x128xf32>
    %33 = arith.addf %31, %32 : vector<16x128xf32>
    %34 = arith.mulf %33, %33 : vector<16x128xf32>
    %35 = arith.mulf %33, %34 : vector<16x128xf32>
    %cst_17 = arith.constant 4.471500e-02 : f32
    %36 = vector.broadcast %cst_17 : f32 to vector<16x128xf32>
    %37 = arith.mulf %36, %35 : vector<16x128xf32>
    %38 = arith.addf %33, %37 : vector<16x128xf32>
    %cst_18 = arith.constant 0.797884583 : f32
    %39 = vector.broadcast %cst_18 : f32 to vector<16x128xf32>
    %40 = arith.mulf %39, %38 : vector<16x128xf32>
    %41 = math.tanh %40 : vector<16x128xf32>
    %cst_19 = arith.constant 1.000000e+00 : f32
    %42 = vector.broadcast %cst_19 : f32 to vector<16x128xf32>
    %43 = arith.addf %42, %41 : vector<16x128xf32>
    %cst_20 = arith.constant 5.000000e-01 : f32
    %44 = vector.broadcast %cst_20 : f32 to vector<16x128xf32>
    %45 = arith.mulf %44, %43 : vector<16x128xf32>
    %46 = arith.mulf %33, %45 : vector<16x128xf32>
    %47 = arith.truncf %46 : vector<16x128xf32> to vector<16x128xbf16>
    %c0_21 = arith.constant 0 : index
    %c0_22 = arith.constant 0 : index
    %48 = vector.load %arg6[%c0_21, %c0_22] : memref<128x128xbf16, #tpu.memory_space<vmem>>, vector<128x128xbf16>
    %cst_23 = arith.constant dense<0.000000e+00> : vector<16x128xf32>
    %49 = tpu.matmul %47, %48, %cst_23 {dimension_numbers = #tpu.dot_dimension_numbers<[1], [0], [0], [1], [0, 0, 1, 1], [], []>} : vector<16x128xbf16>, vector<128x128xbf16>, vector<16x128xf32> -> vector<16x128xf32>
    %50 = vector.broadcast %4 : vector<1x128xf32> to vector<16x128xf32>
    %51 = arith.addf %49, %50 : vector<16x128xf32>
    %52 = arith.addf %51, %0 : vector<16x128xf32>
    %c0_24 = arith.constant 0 : index
    %c0_25 = arith.constant 0 : index
    %53 = vector.load %arg8[%c0_24, %c0_25] : memref<16x128xf32, #tpu.memory_space<vmem>>, vector<16x128xf32>
    tpu.vector_store %arg8[%c0_24, %c0_25], %52 {strides = array<i32>} : memref<16x128xf32, #tpu.memory_space<vmem>>, vector<16x128xf32>,
    return
  }
  func.func @transform_0(%arg0: i32) -> (i32, i32) {
    %c0_i32 = arith.constant 0 : i32
    %c0_i32_0 = arith.constant 0 : i32
    return %arg0, %c0_i32 : i32, i32
  }
  func.func @transform_1(%arg0: i32) -> (i32, i32) {
    %c0_i32 = arith.constant 0 : i32
    %c0_i32_0 = arith.constant 0 : i32
    %c0_i32_1 = arith.constant 0 : i32
    return %c0_i32, %c0_i32_0 : i32, i32
  }
  func.func @transform_2(%arg0: i32) -> (i32, i32) {
    %c0_i32 = arith.constant 0 : i32
    %c0_i32_0 = arith.constant 0 : i32
    %c0_i32_1 = arith.constant 0 : i32
    return %c0_i32, %c0_i32_0 : i32, i32
  }
  func.func @transform_3(%arg0: i32) -> (i32, i32) {
    %c0_i32 = arith.constant 0 : i32
    %c0_i32_0 = arith.constant 0 : i32
    %c0_i32_1 = arith.constant 0 : i32
    return %c0_i32, %c0_i32_0 : i32, i32
  }
  func.func @transform_4(%arg0: i32) -> (i32, i32) {
    %c0_i32 = arith.constant 0 : i32
    %c0_i32_0 = arith.constant 0 : i32
    %c0_i32_1 = arith.constant 0 : i32
    return %c0_i32, %c0_i32_0 : i32, i32
  }
  func.func @transform_5(%arg0: i32) -> (i32, i32) {
    %c0_i32 = arith.constant 0 : i32
    %c0_i32_0 = arith.constant 0 : i32
    %c0_i32_1 = arith.constant 0 : i32
    return %c0_i32, %c0_i32_0 : i32, i32
  }
  func.func @transform_6(%arg0: i32) -> (i32, i32) {
    %c0_i32 = arith.constant 0 : i32
    %c0_i32_0 = arith.constant 0 : i32
    %c0_i32_1 = arith.constant 0 : i32
    return %c0_i32, %c0_i32_0 : i32, i32
  }
  func.func @transform_7(%arg0: i32) -> (i32, i32) {
    %c0_i32 = arith.constant 0 : i32
    %c0_i32_0 = arith.constant 0 : i32
    return %arg0, %c0_i32 : i32, i32
  }
}

</mosaic_0001>

<bundles_post_ra>
// kernel: tpu_custom_call.1
= control target key start
LH: loop header
LB: loop body
LE: loop exit
PB: predicated region body
PF: predicated region fallthrough
CT: control target
= control target key end

     0   :  { %12 = vsyncpa [#allocation3], 0  ;;  %s1450_s0 = inlined_call_operand.hbm [shape: f32[18,128], index: 0, kind: input, shape index: {}]   ;;  %s1451_s1 = inlined_call_operand.vmem [shape: f32[1,128], index: 1, kind: input, shape index: {}]   ;;  %s1452_s2 = inlined_call_operand.vmem [shape: f32[1,128], index: 2, kind: input, shape index: {}]   ;;  %s1453_s3 = inlined_call_operand.hbm [shape: bf16[128,128], index: 3, kind: input, shape index: {}]   ;;  %s1454_s4 = inlined_call_operand.vmem [shape: f32[1,128], index: 4, kind: input, shape index: {}]   ;;  %s1455_s5 = inlined_call_operand.hbm [shape: bf16[128,128], index: 5, kind: input, shape index: {}]   ;;  %s1456_s6 = inlined_call_operand.vmem [shape: f32[1,128], index: 6, kind: input, shape index: {}]   ;;  %s1457_s7 = inlined_call_operand.hbm [shape: f32[18,128], index: 7, kind: output, shape index: {}]  }
   0x1   :  { %14 = vsyncpa [#allocation3 + $0x1], 0 }
   0x2   :  { %15 = vsyncpa [#allocation6], 0 }
   0x3   :  { %16 = vsyncpa [#allocation4], 0 }
   0x4   :  { %18 = vsyncpa [#allocation4 + $0x1], 0  ;;  %s1157_s24 = smov 0   ;;  %s1159_s25 = smov 0  }
   0x5   :  { %s1161_s26 = smov 0   ;;  %s1163_s27 = smov 0  }
   0x6 LB: > { %s1178_s28 = sadd.s32 4294967295, %s1103_s27   ;;  %s751_s29 = sadd.s32 4294967294, %s1103_s27   ;;  %s1103_s27 = sphi %s1163_s27, %s1481_s27   ;;  %s1099_s26 = sphi %s1161_s26, %s1485_s26   ;;  %s1095_s25 = sphi %s1159_s25, %s1484_s25   ;;  %s1091_s24 = sphi %s1157_s24, %s1483_s24  }
   0x7   : > { %s1182_s30 = sadd.s32 1, %s1103_s27   ;;  %s31_s8 = sadd.s32 1, %s1099_s26 }
   0x8   : > { %1464 = sst [smem:[#allocation12_spill]] %s1182_s30  ;;  %s28_s9 = ssub.s32 %s1103_s27, %s1182_s30 }
   0x9   : > { %p38_p0 = scmp.ne.s32.totalorder %s1099_s26, %s1095_s25  ;;  %p29_p1 = scmp.eq.s32.totalorder %s28_s9, 0 }
   0xa   : > { %p39_p2 = scmp.eq.s32.totalorder %s1103_s27, 0  ;;  %p44_p3 = scmp.ne.s32.totalorder %s1095_s25, %s1091_s24 }
   0xb   : > { %p1458_p4 = scmp.eq.s32.totalorder %s1178_s28, 0  ;;  %p194_p7 = scmp.eq.s32.totalorder %s1178_s28, 1 }
   0xc   : > { %s1194_s10 = scalar_select %p29_p1, %s1099_s26, %s31_s8  }
   0xd   : > { %p1196_p5 = por %p39_p2, %p38_p0  ;;  %p1202_p6 = por %p1458_p4, %p44_p3 }
   0xe   : > { %1465 = sst [smem:[#allocation13_spill]] %s1194_s10  ;;  %p200_p8 = scmp.eq.s32.totalorder %s751_s29, 1 }
   0xf   : > { %s1466_s11 = scalar_select %p1196_p5, 1, 0 }
  0x10   : > { %s1467_s12 = scalar_select %p1202_p6, 1, 0 }
  0x11   : > { %p752_p9 = scmp.ge.s32.totalorder %s1103_s27, 1  ;;  %p207_p10 = scmp.lt.s32.totalorder %s1103_s27, 3 }
  0x12   : > { %p1209_p11 = por %p194_p7, %p38_p0  ;;  %p1213_p12 = por %p200_p8, %p44_p3 }
  0x13   : > { %p1217_p13 = pnand %p752_p9, %p207_p10  ;;  %s1105_s16 = smov [#allocation5]  }
  0x14   : > { %s1468_s13 = scalar_select %p1209_p11, 1, 0 }
  0x15   : > { %s1469_s14 = scalar_select %p1213_p12, 1, 0 }
  0x16   : > { %s1471_s15 = scalar_select %p1217_p13, 1, 0 }
  0x17   : > { %1470 = sst [smem:[#allocation14_spill]] %s1469_s14  ;;  %p867_p1 = pneg %p1217_p13 }
  0x18   : > { %s225_s17 = sshll.u32 %s1105_s16, 4  ;;  %s1106_s19 = smov [#allocation7]   ;;  %s226_s17 = int_to_ptr.vmem [resolvable:$true] %s225_s17 }
  0x19   : > { %p1225_p2 = pnand %p867_p1, %p1458_p4  ;;  %s241_s20 = sshll.u32 %s1106_s19, 4  ;;  %s1229_s20 = int_to_ptr.vmem [resolvable:$true] %s241_s20 }
  0x1a   : > { %s949_s23 = scalar_lea.hbm %s1453_s3, 1024 }
  0x1b   : > { %p950_p0 = scmp.ne.s32.totalorder %s1453_s3, %s949_s23  ;;  %p951_p3 = pneg %p1225_p2 }
  0x1c   : > { %p956_p9 = scmp.lt.u32.totalorder %s949_s23, %s1453_s3 }
  0x1d   : > { %p952_p7 = pnand %p951_p3, %p950_p0 }
  0x1f   : > { %p953_p8 = pneg %p952_p7 }
  0x21   : > { %p958_p10 = pnand %p956_p9, %p953_p8 }
  0x23   : > { %961 = shalt.err (!%p958_p10)
}
  0x24   : > { %s962_s19 = scalar_lea.vmem %s226_s17, 1024  ;;  %p970_p11 = scmp.lt.s32.totalorder %s226_s17, %s226_s17 }
  0x25   : > { %p963_p1 = scmp.ne.s32.totalorder %s226_s17, %s962_s19  ;;  %p971_p6 = scmp.lt.s32.totalorder %s962_s19, %s962_s19 }
  0x27   : > { %p965_p4 = pnand %p963_p1, %p951_p3  ;;  %p972_p13 = por %p971_p6, %p970_p11 }
  0x29   : > { %p966_p12 = pneg %p965_p4 }
  0x2b   : > { %p973_p5 = pnand %p972_p13, %p966_p12 }
  0x2d   : > { %976 = shalt.err (!%p973_p5)
}
  0x2e   : > { %s1107_s21 = smov 64   ;;  %s1108_s22 = smov 4  }
  0x2f   : > { %870 = dma.hbm_to_vmem [thread:$0]  (!%p1225_p2), %s1453_s3, 1024, %s226_s17, [#allocation6], %s1107_s21, %s1107_s21, %s1108_s22  }
  0x30   : > { %s977_s16 = scalar_lea.hbm %s1455_s5, 1024 }
  0x31   : > { %p978_p4 = scmp.ne.s32.totalorder %s1455_s5, %s977_s16  ;;  %p984_p11 = scmp.lt.u32.totalorder %s977_s16, %s1455_s5 }
  0x33   : > { %p980_p5 = pnand %p978_p4, %p951_p3 }
  0x35   : > { %p981_p6 = pneg %p980_p5 }
  0x37   : > { %p986_p12 = pnand %p984_p11, %p981_p6 }
  0x39   : > { %989 = shalt.err (!%p986_p12)
}
  0x3a   : > { %s990_s17 = scalar_lea.vmem %s1229_s20, 1024  ;;  %p998_p8 = scmp.lt.s32.totalorder %s1229_s20, %s1229_s20 }
  0x3b   : > { %p991_p13 = scmp.ne.s32.totalorder %s1229_s20, %s990_s17  ;;  %p999_p9 = scmp.lt.s32.totalorder %s990_s17, %s990_s17 }
  0x3d   : > { %p993_p0 = pnand %p991_p13, %p951_p3  ;;  %p1000_p10 = por %p999_p9, %p998_p8 }
  0x3f   : > { %p994_p7 = pneg %p993_p0 }
  0x41   : > { %p1001_p1 = pnand %p1000_p10, %p994_p7 }
  0x43   : > { %1004 = shalt.err (!%p1001_p1)
}
  0x44   : > { %873 = dma.hbm_to_vmem [thread:$0]  (!%p1225_p2), %s1455_s5, 1024, %s1229_s20, [#allocation6], %s1107_s21, %s1107_s21, %s1108_s22  }
  0x45   : > { %p755_p4 = scmp.ge.s32.totalorder %s1103_s27, 2 }
  0x46   : > { %p1473_p3 = scmp.ne.s32.totalorder (!%p755_p4), %s1466_s11, 0 }
  0x47   : > { %254 = sbr.rel (%p755_p4) target bundleno = 113 (0x71), region = 40 }
  0x4e   : > { %257 = sbr.rel (!%p1473_p3) target bundleno = 113 (0x71), region = 44  ;;  %s258_s14 = sand.u32 (%p1473_p3), 1, %s1099_s26  }
  0x4f   : > { %s757_s23 = sshll.u32 (%p1473_p3), %s1103_s27, 1  ;;  %s756_s29 = sshll.u32 (%p1473_p3), %s258_s14, 4 }
  0x50   : > { %s264_s8 = ssub.s32 (%p1473_p3), 3, %s757_s23  ;;  %s1288_s21 = scalar_lea.sflag (%p1473_p3), [#allocation3], %s258_s14 }
  0x51   : > { %p265_p5 = scmp.lt.s32.totalorder (%p1473_p3), %s264_s8, 2  ;;  %s262_s22 = scalar_lea.vmem (%p1473_p3), [#allocation2], %s756_s29 }
  0x55   : > { %s1487_s8 = smov (!%p265_p5, %s264_s8), 2 }
  0x56   : > { %s1285_s18 = sshll.u32 %s1487_s8, 7 }
  0x57   : > { %s269_s20 = ssub.s32 256, %s1285_s18 }
  0x58   : > { %270 = vsyncadd %s1288_s21, %s269_s20  ;;  %p759_p2 = scmp.ne.s32.totalorder %s1285_s18, 0  ;;  %s797_s11 = sshll.u32 %s1103_s27, 8 }
  0x59   : > { %s1296_s19 = scalar_lea.hbm %s1450_s0, %s797_s11  ;;  %s275_s17 = sshll.u32 %s262_s22, 4  ;;  %s1298_s17 = int_to_ptr.vmem [resolvable:$true] %s275_s17 }
  0x5a   : > { %s1005_s30 = scalar_lea.hbm %s1296_s19, %s1285_s18  ;;  %s1009_s23 = scalar_lea.hbm %s1450_s0, 384 }
  0x5b   : > { %p1006_p6 = scmp.ne.s32.totalorder %s1296_s19, %s1005_s30  ;;  %p1010_p13 = scmp.lt.u32.totalorder %s1296_s19, %s1450_s0 }
  0x5c   : > { %p1011_p0 = scmp.lt.u32.totalorder %s1009_s23, %s1005_s30  ;;  %p1013_p8 = scmp.lt.u32.totalorder %s1005_s30, %s1296_s19 }
  0x5d   : > { %p1007_p11 = pnand %p1006_p6, %p759_p2 }
  0x5e   : > { %p1012_p7 = por %p1011_p0, %p1010_p13 }
  0x5f   : > { %p1008_p12 = pneg %p1007_p11 }
  0x60   : > { %p1014_p9 = por %p1013_p8, %p1012_p7 }
  0x62   : > { %p1015_p10 = pnand %p1014_p9, %p1008_p12 }
  0x64   : > { %1018 = shalt.err (!%p1015_p10)
}
  0x65   : > { %s1019_s20 = scalar_lea.vmem %s1298_s17, %s1285_s18  ;;  %s1109_s22 = smov [#allocation2]  }
  0x66   : > { %p1020_p1 = scmp.ne.s32.totalorder %s1298_s17, %s1019_s20  ;;  %s1023_s11 = sshll.u32 %s1109_s22, 4  ;;  %s1024_s11 = int_to_ptr.vmem [resolvable:$false] %s1023_s11 }
  0x67   : > { %s1025_s9 = scalar_lea.vmem %s1024_s11, 512  ;;  %p1026_p6 = scmp.lt.s32.totalorder %s1298_s17, %s1024_s11 }
  0x68   : > { %p1021_p3 = pnand %p1020_p1, %p759_p2  ;;  %p1027_p11 = scmp.lt.s32.totalorder %s1025_s9, %s1019_s20 }
  0x6a   : > { %p1022_p5 = pneg %p1021_p3  ;;  %p1028_p13 = por %p1027_p11, %p1026_p6 }
  0x6c   : > { %p1029_p0 = pnand %p1028_p13, %p1022_p5 }
  0x6e   : > { %1032 = shalt.err (!%p1029_p0)
}
  0x6f   : > { %s1110_s16 = smov 128   ;;  %s1111_s30 = smov 8  }
  0x70   : > { %281 = dma.hbm_to_vmem [thread:$0]  (%p759_p2), %s1296_s19, %s1285_s18, %s1298_s17, %s1288_s21, %s1110_s16, %s1110_s16, %s1111_s30  }
  0x71 PF: > { %p1474_p12 = scmp.ne.s32.totalorder %s1471_s15, 0 }
  0x72   : > { %s1328_s10 = sand.u32 (!%p1474_p12), 1, %s1095_s25   ;;  %p1475_p7 = scmp.ne.s32.totalorder (!%p1474_p12), %s1467_s12, 0 }
  0x73   : > { %287 = sbr.rel (%p1474_p12) target bundleno = 794 (0x31a), region = 48  ;;  %s764_s14 = sshll.u32 (!%p1474_p12), %s1328_s10, 4 }
  0x74   : > { %s290_s23 = scalar_lea.sflag (!%p1474_p12), [#allocation3], %s1328_s10  ;;  %s293_s29 = scalar_lea.vmem (!%p1474_p12), [#allocation2], %s764_s14 }
  0x7a   : > { %1078 = dma.done.wait (%p1475_p7), %s290_s23, 256  }
  0x7b   : > { %1080 = vsyncadd (%p1475_p7), %s290_s23, 4294967040  ;;  %p1476_p2 = scmp.eq.s32.totalorder %s1178_s28, 0 }
  0x7d   : > { %1082 = dma.done.wait (%p1476_p2), [#allocation6], 2048   ;;  %p1477_p8 = pmov %p1476_p2 }
  0x7e   : > { %v1342_v0 = vld [vmem:[%s293_s29] sm:$0xff]  ;;  %v1344_v1 = vld [vmem:[%s293_s29 + $0x8] sm:$0xff]  ;;  %v1112_v5 = vmov 0.0   ;;  %vm1113_vm0 = vmmov 0   ;;  %s331_s22 = scalar_lea.vmem [#allocation8], %s764_s14  ;;  %s640_s11 = scalar_lea.sflag [#allocation4], %s1328_s10 }
  0x7f   : > { %1084 = vsyncadd (%p1477_p8), [#allocation6], 4294965248  ;;  %349 = vadd.xlane.f32.xlu0 %v1342_v0  ;;  %v355_v2 = vmul.f32 %v1342_v0, %v1342_v0  ;;  %v356_v3 = vmul.f32 %v1344_v1, %v1344_v1  ;;  %v925_v4 = vld [vmem:[#allocation5] sm:$0xff]   ;;  %817 = vmatprep.subr.bf16.mxu0 %v1112_v5  ;;  %v926_v6 = vld [vmem:[#allocation5 + $0x8] sm:$0xff]   ;;  %p1478_p9 = scmp.ne.s32.totalorder %s1468_s13, 0 }
  0x80   : > { %837 = vmatprep.subr.bf16.mxu1 %v1112_v5  ;;  %818 = vmatpush3.bf16.msra.mxu0 %v925_v4  ;;  %v927_v7 = vld [vmem:[#allocation5 + $0x10] sm:$0xff]   ;;  %v928_v8 = vld [vmem:[#allocation5 + $0x18] sm:$0xff]   ;;  %v929_v9 = vld [vmem:[#allocation5 + $0x20] sm:$0xff]   ;;  %s789_s9 = sshll.u32 (%p1478_p9), %s1178_s28, 1 }
  0x81   : > { %357 = vadd.xlane.f32.xlu1 %v355_v2  ;;  %819 = vmatprep.subr.bf16.mxu0 %v1112_v5  ;;  %v930_v10 = vld [vmem:[#allocation5 + $0x28] sm:$0xff]   ;;  %v931_v11 = vld [vmem:[#allocation5 + $0x30] sm:$0xff]   ;;  %v932_v12 = vld [vmem:[#allocation5 + $0x38] sm:$0xff]   ;;  %s648_s16 = ssub.s32 (%p1478_p9), 3, %s789_s9 }
  0x82   : > { %833 = vmatprep.mubr.msk.bf16.mxu0 %vm1113_vm0, %v1112_v5  ;;  %853 = vmatprep.mubr.msk.bf16.mxu1 %vm1113_vm0, %v1112_v5  ;;  %v768_v32 = vld [vmem:[%s1451_s1] ss:$0 sm:$0xff]  ;;  %v934_v43 = vld [vmem:[#allocation7 + $0x8] sm:$0xff]   ;;  %v935_v44 = vld [vmem:[#allocation7 + $0x10] sm:$0xff]   ;;  %p649_p10 = scmp.lt.s32.totalorder (%p1478_p9), %s648_s16, 2 }
  0x83   : > { %351 = vadd.xlane.f32.xlu0 %v1344_v1  ;;  %v769_v37 = vld [vmem:[%s1452_s2] ss:$0 sm:$0xff]  ;;  %v936_v45 = vld [vmem:[#allocation7 + $0x18] sm:$0xff]   ;;  %v938_v47 = vld [vmem:[#allocation7 + $0x28] sm:$0xff]  }
  0x84   : > { %820 = vmatpush3.bf16.msra.mxu0 %v926_v6  ;;  %v933_v42 = vld [vmem:[#allocation7] sm:$0xff]   ;;  %v939_v48 = vld [vmem:[#allocation7 + $0x30] sm:$0xff]   ;;  %v940_v49 = vld [vmem:[#allocation7 + $0x38] sm:$0xff]  }
  0x85   : > { %359 = vadd.xlane.f32.xlu1 %v356_v3  ;;  %821 = vmatprep.subr.bf16.mxu0 %v1112_v5  ;;  %v937_v46 = vld [vmem:[#allocation7 + $0x20] sm:$0xff]  }
  0x86   : > { %838 = vmatpush3.bf16.msra.mxu1 %v933_v42  ;;  %v770_v50 = vld [vmem:[%s1454_s4] ss:$0 sm:$0xff] }
  0x87   : > { %839 = vmatprep.subr.bf16.mxu1 %v1112_v5 }
  0x88   : > { %822 = vmatpush3.bf16.msra.mxu0 %v927_v7 }
  0x89   : > { %823 = vmatprep.subr.bf16.mxu0 %v1112_v5 }
  0x8a   : > { %840 = vmatpush3.bf16.msra.mxu1 %v934_v43 }
  0x8b   : > { %841 = vmatprep.subr.bf16.mxu1 %v1112_v5 }
  0x8c   : > { %824 = vmatpush3.bf16.msra.mxu0 %v928_v8 }
  0x8d   : > { %825 = vmatprep.subr.bf16.mxu0 %v1112_v5 }
  0x8e   : > { %842 = vmatpush3.bf16.msra.mxu1 %v935_v44 }
  0x8f   : > { %843 = vmatprep.subr.bf16.mxu1 %v1112_v5 }
  0x90   : > { %826 = vmatpush3.bf16.msra.mxu0 %v929_v9 }
  0x91   : > { %827 = vmatprep.subr.bf16.mxu0 %v1112_v5 }
  0x92   : > { %844 = vmatpush3.bf16.msra.mxu1 %v936_v45 }
  0x93   : > { %845 = vmatprep.subr.bf16.mxu1 %v1112_v5 }
  0x94   : > { %828 = vmatpush3.bf16.msra.mxu0 %v930_v10 }
  0x95   : > { %829 = vmatprep.subr.bf16.mxu0 %v1112_v5 }
  0x96   : > { %846 = vmatpush3.bf16.msra.mxu1 %v937_v46 }
  0x97   : > { %847 = vmatprep.subr.bf16.mxu1 %v1112_v5 }
  0x98   : > { %830 = vmatpush3.bf16.msra.mxu0 %v931_v11 }
  0x99   : > { %831 = vmatprep.subr.bf16.mxu0 %v1112_v5 }
  0x9a   : > { %848 = vmatpush3.bf16.msra.mxu1 %v938_v47 }
  0x9b   : > { %849 = vmatprep.subr.bf16.mxu1 %v1112_v5 }
  0x9c   : > { %832 = vmatpush3.bf16.msra.mxu0 %v932_v12 }
  0x9e   : > { %850 = vmatpush3.bf16.msra.mxu1 %v939_v48 }
  0x9f   : > { %851 = vmatprep.subr.bf16.mxu1 %v1112_v5 }
  0xa2   : > { %852 = vmatpush3.bf16.msra.mxu1 %v940_v49 }
 0x10c   : > { %v350_v13 = vpop.xlane.xlu0 %349 }
 0x10d   : > { %v353_v14 = vmul.f32 0.03125, %v350_v13 }
 0x10e   : > { %v358_v15 = vpop.xlane.xlu1 %357 }
 0x10f   : > { %v363_v16 = vmul.f32 %v353_v14, %v353_v14  ;;  %v361_v17 = vmul.f32 0.03125, %v358_v15  ;;  %v369_v29 = vsub.f32 %v1342_v0, %v353_v14  ;;  %v779_v14 = vld [vmem:[%s1456_s6] ss:$0 sm:$0xff] }
 0x110   : > { %v352_v18 = vpop.xlane.xlu0 %351 }
 0x111   : > { %v365_v19 = vsub.f32 %v361_v17, %v363_v16  ;;  %v354_v20 = vmul.f32 0.03125, %v352_v18 }
 0x112   : > { %v360_v21 = vpop.xlane.xlu1 %359 }
 0x113   : > { %v367_v22 = vmax.f32 %v365_v19, 0.0  ;;  %v364_v23 = vmul.f32 %v354_v20, %v354_v20  ;;  %v362_v24 = vmul.f32 0.03125, %v360_v21  ;;  %v370_v33 = vsub.f32 %v1344_v1, %v354_v20 }
 0x115   : > { %v371_v25 = vadd.f32 1e-05, %v367_v22  ;;  %v366_v26 = vsub.f32 %v362_v24, %v364_v23 }
 0x117   : > { %941 = vrsqrt.f32 %v371_v25  ;;  %v368_v27 = vmax.f32 %v366_v26, 0.0 }
 0x119   : > { %v372_v28 = vadd.f32 1e-05, %v368_v27 }
 0x11b   : > { %943 = vrsqrt.f32 %v372_v28 }
 0x121   : > { %v942_v30 = vpop.eup %941 }
 0x122   : > { %v375_v31 = vmul.f32 %v942_v30, %v369_v29 }
 0x124   : > { %v383_v36 = vmul.f32 %v768_v32, %v375_v31 }
 0x125   : > { %v944_v34 = vpop.eup %943 }
 0x126   : > { %v376_v35 = vmul.f32 %v944_v34, %v370_v33  ;;  %v391_v39 = vadd.f32 %v769_v37, %v383_v36 }
 0x128   : > { %v384_v38 = vmul.f32 %v768_v32, %v376_v35 }
 0x12a   : > { %v392_v40 = vadd.f32 %v769_v37, %v384_v38 }
 0x12c   : > { %v393_v41 = vpack.c.bf16 %v392_v40, %v391_v39 }
 0x12e   : > { %834 = vmatmul.mubr.bf16.vlgmr.msra.gmra.mrb[0].mxu0 %v393_v41 }
 0x201   : > { %v498_v51 = vpop.f32.mrb[0].mxu0 }
 0x202   : > { %v499_v52 = vadd.f32 %v770_v50, %v498_v51  ;;  %v835_v53 = vpop.f32.mrb[1].mxu0 }
 0x203   : > { %v501_v54 = vpop.f32.mrb[2].mxu0 }
 0x204   : > { %v505_v55 = vmul.f32 %v499_v52, %v499_v52  ;;  %v502_v56 = vadd.f32 %v770_v50, %v501_v54  ;;  %v836_v57 = vpop.f32.mrb[3].mxu0 }
 0x206   : > { %v507_v58 = vmul.f32 %v505_v55, %v499_v52  ;;  %v506_v59 = vmul.f32 %v502_v56, %v502_v56 }
 0x208   : > { %v509_v60 = vmul.f32 0.044715, %v507_v58  ;;  %v508_v61 = vmul.f32 %v506_v59, %v502_v56 }
 0x20a   : > { %v511_v62 = vadd.f32 %v509_v60, %v499_v52  ;;  %v510_v63 = vmul.f32 0.044715, %v508_v61 }
 0x20c   : > { %v513_v2 = vmul.f32 0.7978846, %v511_v62  ;;  %v512_v3 = vadd.f32 %v510_v63, %v502_v56 }
 0x20e   : > { %945 = vtanh.f32 %v513_v2  ;;  %v514_v4 = vmul.f32 0.7978846, %v512_v3 }
 0x210   : > { %947 = vtanh.f32 %v514_v4 }
 0x218   : > { %v946_v5 = vpop.eup %945 }
 0x219   : > { %v517_v6 = vadd.f32 1.0, %v946_v5 }
 0x21a   : > { %v948_v7 = vpop.eup %947 }
 0x21b   : > { %v518_v8 = vadd.f32 1.0, %v948_v7  ;;  %v519_v9 = vmul.f32 0.5, %v517_v6 }
 0x21d   : > { %v520_v10 = vmul.f32 0.5, %v518_v8  ;;  %v521_v11 = vmul.f32 %v519_v9, %v499_v52 }
 0x21f   : > { %v522_v12 = vmul.f32 %v520_v10, %v502_v56 }
 0x221   : > { %v523_v13 = vpack.c.bf16 %v522_v12, %v521_v11 }
 0x223   : > { %854 = vmatmul.mubr.bf16.vlgmr.msra.gmra.mrb[0].mxu1 %v523_v13 }
 0x2f6   : > { %v628_v15 = vpop.f32.mrb[0].mxu1 }
 0x2f7   : > { %v629_v16 = vadd.f32 %v779_v14, %v628_v15  ;;  %v855_v17 = vpop.f32.mrb[1].mxu1  ;;  %646 = sbr.rel (!%p1478_p9) target bundleno = 794 (0x31a), region = 64 }
 0x2f8   : > { %v631_v18 = vpop.f32.mrb[2].mxu1 }
 0x2f9   : > { %v635_v19 = vadd.f32 %v629_v16, %v1342_v0  ;;  %v632_v20 = vadd.f32 %v779_v14, %v631_v18  ;;  %v856_v21 = vpop.f32.mrb[3].mxu1 }
 0x2fb   : > { %637 = vst [vmem:[%s331_s22] sm:$0xff] %v635_v19  ;;  %v636_v22 = vadd.f32 %v632_v20, %v1344_v1 }
 0x2fd   : > { %638 = vst [vmem:[%s331_s22 + $0x8] sm:$0xff] %v636_v22 }
 0x2fe   : > { %s1489_s16 = smov (!%p649_p10, %s648_s16), 2 }
 0x2ff   : > { %s1392_s30 = sshll.u32 %s1489_s16, 7 }
 0x300   : > { %s653_s23 = ssub.s32 256, %s1392_s30 }
 0x301   : > { %654 = vsyncadd %s640_s11, %s653_s23  ;;  %p791_p1 = scmp.ne.s32.totalorder %s1392_s30, 0  ;;  %s798_s14 = sshll.u32 %s1178_s28, 8 }
 0x302   : > { %s1402_s12 = scalar_lea.hbm %s1457_s7, %s798_s14  ;;  %s659_s15 = sshll.u32 %s331_s22, 4  ;;  %s1404_s15 = int_to_ptr.vmem [resolvable:$true] %s659_s15 }
 0x303   : > { %s1033_s18 = scalar_lea.vmem %s1404_s15, %s1392_s30  ;;  %s1114_s21 = smov [#allocation8]  }
 0x304   : > { %p1034_p3 = scmp.ne.s32.totalorder %s1404_s15, %s1033_s18  ;;  %s1037_s19 = sshll.u32 %s1114_s21, 4  ;;  %s1038_s19 = int_to_ptr.vmem [resolvable:$false] %s1037_s19 }
 0x305   : > { %s1039_s28 = scalar_lea.vmem %s1038_s19, 512  ;;  %p1040_p11 = scmp.lt.s32.totalorder %s1404_s15, %s1038_s19 }
 0x306   : > { %p1035_p5 = pnand %p1034_p3, %p791_p1  ;;  %p1041_p13 = scmp.lt.s32.totalorder %s1039_s28, %s1033_s18 }
 0x308   : > { %p1036_p6 = pneg %p1035_p5  ;;  %p1042_p0 = por %p1041_p13, %p1040_p11 }
 0x30a   : > { %p1043_p12 = pnand %p1042_p0, %p1036_p6 }
 0x30c   : > { %1046 = shalt.err (!%p1043_p12)
}
 0x30d   : > { %s1047_s17 = scalar_lea.hbm %s1402_s12, %s1392_s30  ;;  %s1051_s22 = scalar_lea.hbm %s1457_s7, 384 }
 0x30e   : > { %p1048_p7 = scmp.ne.s32.totalorder %s1402_s12, %s1047_s17  ;;  %p1052_p9 = scmp.lt.u32.totalorder %s1402_s12, %s1457_s7 }
 0x30f   : > { %p1053_p10 = scmp.lt.u32.totalorder %s1051_s22, %s1047_s17  ;;  %p1055_p5 = scmp.lt.u32.totalorder %s1047_s17, %s1402_s12 }
 0x310   : > { %p1049_p2 = pnand %p1048_p7, %p791_p1 }
 0x311   : > { %p1054_p3 = por %p1053_p10, %p1052_p9 }
 0x312   : > { %p1050_p8 = pneg %p1049_p2 }
 0x313   : > { %p1056_p6 = por %p1055_p5, %p1054_p3 }
 0x315   : > { %p1057_p11 = pnand %p1056_p6, %p1050_p8 }
 0x317   : > { %1060 = shalt.err (!%p1057_p11)
}
 0x318   : > { %s1115_s23 = smov 128   ;;  %s1116_s14 = smov 8  }
 0x319   : > { %665 = dma.vmem_to_hbm [thread:$0]  (%p791_p1), %s1404_s15, %s1392_s30, %s1402_s12, %s640_s11, %s1115_s23, %s1115_s23, %s1116_s14  }
 0x31a PF: > { %s1479_s13 = sld [smem:[#allocation14_spill]]  ;;  %s674_s29 = sand.u32 1, %s1091_s24  }
 0x31b   : > { %s675_s18 = scalar_lea.sflag [#allocation4], %s674_s29 }
 0x320   : > { %p1480_p13 = scmp.ne.s32.totalorder %s1479_s13, 0 }
 0x322   : > { %p875_p0 = pnand %p755_p4, %p1480_p13 }
 0x324   : > { %1086 = dma.done.wait (!%p875_p0), %s675_s18, 256  }
 0x325   : > { %1088 = vsyncadd (!%p875_p0), %s675_s18, 4294967040  ;;  %s1481_s27 = sld [smem:[#allocation12_spill]]  ;;  %s1482_s21 = sld [smem:[#allocation13_spill]] }
 0x326   : > { %s1483_s24 = smov %s1095_s25  ;;  %s1484_s25 = smov %s1099_s26 }
 0x32b   : > { %p21_p12 = scmp.ge.s32.totalorder %s1481_s27, 4   ;;  %s1485_s26 = smov %s1482_s21 }
 0x32d   :  { %23 = sbr.rel (!%p21_p12) target bundleno = 6 (0x6), region = 101 }
 0x334   :  { %680 = vsyncpa [#allocation3], 1 }
 0x335   :  { %682 = vsyncpa [#allocation3 + $0x1], 1 }
 0x336   :  { %683 = vsyncpa [#allocation6], 1 }
 0x337   :  { %684 = vsyncpa [#allocation4], 1 }
 0x338   :  { %686 = vsyncpa [#allocation4 + $0x1], 1 }

</bundles_post_ra>
